<compile_context>
chip_gen: v5e
topology: v5e:2x2
jax: 0.10.0
libtpu: 0.0.40
codegen_flags: <defaults>
</compile_context>

<pallas_src>
import jax
import jax.numpy as jnp
from jax import lax
from jax.experimental import pallas as pl
from jax.experimental.pallas import tpu as pltpu
import numpy as np


_LN_EPS = 1e-5
# Per-image f32 slab size above which the per-image loop switches from a fully
# unrolled Python loop to lax.fori_loop (bounded live ranges for big slabs).
_UNROLL_SLAB_BYTES = 1 << 20


def _patch_embed_kernel(pt_ref, w_ref, b_ref, o_ref):
    # pt_ref: (Bt, K, N)    patches^T for Bt images (K = Cin*4, N = Ho*Wo)
    # w_ref:  (Cout, K)     flattened conv weight
    # b_ref:  (Cout, 1)     bias (f32)
    # o_ref:  (Bt, Cout, N) layer-normed output
    w = w_ref[...]
    b = b_ref[...]
    bt = pt_ref.shape[0]
    cout, n = o_ref.shape[1], o_ref.shape[2]
    inv_cnt = 1.0 / float(cout * n)

    def one_image(i):
        # 2x2/stride-2 conv for image i as one MXU matmul, f32 accumulation,
        # lane-dense (Cout, N) result.
        y = jnp.dot(w, pt_ref[i], preferred_element_type=jnp.float32)  # (Cout, N)
        y = y + b
        # Two-pass LayerNorm over ALL (Cout, N) elements of this image
        # (matches F.layer_norm(y, (C, H, W)), eps=1e-5; avoids cancellation).
        mean = jnp.sum(y) * inv_cnt
        yc = y - mean
        var = jnp.sum(yc * yc) * inv_cnt
        o_ref[i] = (yc * lax.rsqrt(var + _LN_EPS)).astype(o_ref.dtype)

    if bt == 1 or cout * n * 4 <= _UNROLL_SLAB_BYTES:
        # Small per-image slabs: unrolled loop (best LLO scheduling).
        for i in range(bt):
            one_image(i)
    else:
        # Large slabs: fori_loop bounds the live range of the f32 temporaries
        # to one image at a time (avoids spills / VMEM blow-up on v7x).
        def body(i, carry):
            one_image(i)
            return carry
        lax.fori_loop(0, bt, body, 0)


def _vmem_capacity_bytes():
    try:
        return int(pltpu.get_tpu_info().vmem_capacity_bytes)
    except Exception:
        return 64 * 1024 * 1024  # conservative default: smallest (v7x-like) VMEM


def _pick_batch_block(B, K, N, Cout, itemsize, vmem_cap):
    """Pick Bt (batch elements per grid step) and the VMEM limit to request.

    Honest per-batch accounting:
      - double-buffered input block  : 2 * K    * N * itemsize
      - double-buffered output block : 2 * Cout * N * itemsize
      - in-kernel f32 intermediates  : ~3 * Cout * N * 4  (y, centered y, store temp)
    Fixed costs: double-buffered weight/bias blocks + slack.
    """
    vmem_limit = max(32 * 1024 * 1024,
                     min(int(vmem_cap * 3 // 4), 100 * 1024 * 1024))
    budget = (vmem_limit * 2) // 3

    per_batch = 2 * (K + Cout) * N * itemsize + 3 * Cout * N * 4
    fixed = 2 * Cout * K * itemsize + 2 * Cout * 4 + (1 << 20)
    max_bt = max(1, (budget - fixed) // max(per_batch, 1))
    max_bt = int(min(max_bt, 8))  # bound per-step footprint / unroll length

    divisors = [d for d in range(1, B + 1) if B % d == 0 and d <= max_bt]
    if not divisors:
        divisors = [1]  # prime / awkward B: correct, just small blocks

    # Small-VMEM parts (v7x-like) have two TensorCores: prefer an even number
    # of grid steps so the 'parallel' batch axis splits across both cores.
    # Big-VMEM single-TC parts (v5e/v6e): just take the largest block.
    two_cores = vmem_cap <= 96 * 1024 * 1024
    if two_cores:
        even = [d for d in divisors if (B // d) % 2 == 0]
        bt = max(even) if even else max(divisors)
    else:
        bt = max(divisors)
    return int(bt), int(vmem_limit)


def patch_embed_forward(x, weight, bias):
    """x: (B, Cin, H, W); weight: (Cout, Cin, 2, 2); bias: (Cout,)
    -> (B, Cout, H//2, W//2) (conv stride 2 + per-image LayerNorm)."""
    B, Cin, H, W = x.shape
    Cout = weight.shape[0]
    if H % 2 or W % 2:
        raise ValueError("PatchEmbed requires even H and W (kernel=2, stride=2, pad=0).")
    Ho, Wo = H // 2, W // 2
    N = Ho * Wo
    K = Cin * 4
    dtype = x.dtype
    itemsize = jnp.dtype(dtype).itemsize

    # Transposed patch layout P^T: (B, K, N), K order = (cin, kh, kw), matching
    # PyTorch's (Cout, Cin, kh, kw) weight flattening.  Stays in the model dtype
    # (no f32 upcast).  TODO(synk): fold this extraction into the kernel (see
    # header) to delete the extra HBM round trip of x.
    xp = x.reshape(B, Cin, Ho, 2, Wo, 2)
    xp = jnp.transpose(xp, (0, 1, 3, 5, 2, 4))        # (B, Cin, 2, 2, Ho, Wo)
    patches_t = xp.reshape(B, K, N)                   # (B, K, N)

    w_flat = weight.reshape(Cout, K).astype(dtype)    # (Cout, K) — no transpose
    b_col = bias.reshape(Cout, 1).astype(jnp.float32)

    vmem_cap = _vmem_capacity_bytes()
    Bt, vmem_limit = _pick_batch_block(B, K, N, Cout, itemsize, vmem_cap)
    grid = (B // Bt,)

    bytes_accessed = (
        patches_t.size * itemsize
        + w_flat.size * itemsize
        + b_col.size * 4
        + B * Cout * N * itemsize
    )

    out = pl.pallas_call(
        _patch_embed_kernel,
        out_shape=jax.ShapeDtypeStruct((B, Cout, N), dtype),
        grid_spec=pltpu.PrefetchScalarGridSpec(
            num_scalar_prefetch=0,
            grid=grid,
            in_specs=[
                # Last two block dims equal the full array dims -> always legal.
                pl.BlockSpec((Bt, K, N), lambda i: (i, 0, 0)),
                pl.BlockSpec((Cout, K), lambda i: (0, 0)),
                pl.BlockSpec((Cout, 1), lambda i: (0, 0)),
            ],
            out_specs=pl.BlockSpec((Bt, Cout, N), lambda i: (i, 0, 0)),
        ),
        compiler_params=pltpu.CompilerParams(
            dimension_semantics=("parallel",),
            vmem_limit_bytes=vmem_limit,
        ),
        cost_estimate=pl.CostEstimate(
            flops=2 * B * N * K * Cout + 6 * B * Cout * N,
            transcendentals=B,
            bytes_accessed=bytes_accessed,
        ),
    )(patches_t, w_flat, b_col)

    # (B, Cout, N) -> (B, Cout, Ho, Wo): pure reshape, no transpose needed.
    return out.reshape(B, Cout, Ho, Wo)


def _reference(x, weight, bias):
    # Pure-JAX reference: conv (NCHW, OIHW) + per-image layer norm over (C,H,W).
    y = lax.conv_general_dilated(
        x.astype(jnp.float32), weight.astype(jnp.float32),
        window_strides=(2, 2), padding="VALID",
        dimension_numbers=("NCHW", "OIHW", "NCHW"))
    y = y + bias.reshape(1, -1, 1, 1).astype(jnp.float32)
    mean = jnp.mean(y, axis=(1, 2, 3), keepdims=True)
    var = jnp.mean((y - mean) ** 2, axis=(1, 2, 3), keepdims=True)
    return (y - mean) * lax.rsqrt(var + _LN_EPS)


if __name__ == "__main__":
    key = jax.random.PRNGKey(0)
    B, Cin, H, W = 2, 4, 16, 16
    Cout = 8  # PatchEmbed(in_channels=4, out_channels=8)

    kx, kw, kb = jax.random.split(key, 3)
    x = jax.random.normal(kx, (B, Cin, H, W), dtype=jnp.float32)

    # kaiming_normal_ (fan_in, relu gain): std = sqrt(2 / fan_in), fan_in = Cin*2*2
    fan_in = Cin * 2 * 2
    std = (2.0 / fan_in) ** 0.5
    weight = jax.random.normal(kw, (Cout, Cin, 2, 2), dtype=jnp.float32) * std
    # Module zero-inits the bias; use a small nonzero bias to also exercise the
    # bias + two-pass-LN path numerically.
    bias = 0.1 * jax.random.normal(kb, (Cout,), dtype=jnp.float32)

    out = jax.block_until_ready(patch_embed_forward(x, weight, bias))
    ref = jax.block_until_ready(_reference(x, weight, bias))

    assert out.shape == (B, Cout, H // 2, W // 2)
    np.testing.assert_allclose(np.asarray(out), np.asarray(ref), atol=1e-4, rtol=1e-4)

    print("KERNEL_OK")
</pallas_src>

<mosaic_0001>
module attributes {stable_mosaic.version = 11 : i64} {
  func.func @_patch_embed_kernel(%arg0: i32, %arg1: memref<1x16x64xf32, #tpu.memory_space<vmem>>, %arg2: memref<8x16xf32, #tpu.memory_space<vmem>>, %arg3: memref<8x1xf32, #tpu.memory_space<vmem>>, %arg4: memref<1x8x64xf32, #tpu.memory_space<vmem>>) attributes {dimension_semantics = [#tpu.dimension_semantics<parallel>], iteration_bounds = array<i64: 2>, scalar_prefetch = 0 : i64, scratch_operands = 0 : i64, tpu.core_type = #tpu.core_type<tc>, window_params = [{transform_indices = @transform_0, window_bounds = array<i64: 1, 16, 64>}, {pipeline_mode = #tpu.pipeline_mode<synchronous>, transform_indices = @transform_1, window_bounds = array<i64: 8, 16>}, {pipeline_mode = #tpu.pipeline_mode<synchronous>, transform_indices = @transform_2, window_bounds = array<i64: 8, 1>}, {transform_indices = @transform_3, window_bounds = array<i64: 1, 8, 64>}]} {
    %c0 = arith.constant 0 : index
    %c0_0 = arith.constant 0 : index
    %0 = vector.load %arg2[%c0, %c0_0] : memref<8x16xf32, #tpu.memory_space<vmem>>, vector<8x16xf32>
    %c0_1 = arith.constant 0 : index
    %c0_2 = arith.constant 0 : index
    %1 = vector.load %arg3[%c0_1, %c0_2] : memref<8x1xf32, #tpu.memory_space<vmem>>, vector<8x1xf32>
    %c0_3 = arith.constant 0 : index
    %c0_4 = arith.constant 0 : index
    %c0_5 = arith.constant 0 : index
    %2 = vector.load %arg1[%c0_3, %c0_4, %c0_5] : memref<1x16x64xf32, #tpu.memory_space<vmem>>, vector<1x16x64xf32>
    %3 = vector.shape_cast %2 : vector<1x16x64xf32> to vector<16x64xf32>
    %cst = arith.constant dense<0.000000e+00> : vector<8x64xf32>
    %4 = tpu.matmul %0, %3, %cst {dimension_numbers = #tpu.dot_dimension_numbers<[1], [0], [0], [1], [0, 0, 1, 1], [], []>} : vector<8x16xf32>, vector<16x64xf32>, vector<8x64xf32> -> vector<8x64xf32>
    %5 = vector.broadcast %1 : vector<8x1xf32> to vector<8x64xf32>
    %6 = arith.addf %4, %5 : vector<8x64xf32>
    %7 = vector.shape_cast %6 : vector<8x64xf32> to vector<1x8x64xf32>
    %cst_6 = arith.constant dense<0.000000e+00> : vector<1xf32>
    %8 = vector.multi_reduction <add>, %7, %cst_6 [1, 2] : vector<1x8x64xf32> to vector<1xf32>
    %9 = vector.shape_cast %8 : vector<1xf32> to vector<1x1x1xf32>
    %10 = vector.extract %9[0, 0, 0] : f32 from vector<1x1x1xf32>
    %cst_7 = arith.constant 0.001953125 : f32
    %11 = arith.mulf %10, %cst_7 : f32
    %12 = vector.broadcast %11 : f32 to vector<8x64xf32>
    %13 = arith.subf %6, %12 : vector<8x64xf32>
    %14 = arith.mulf %13, %13 : vector<8x64xf32>
    %15 = vector.shape_cast %14 : vector<8x64xf32> to vector<1x8x64xf32>
    %cst_8 = arith.constant dense<0.000000e+00> : vector<1xf32>
    %16 = vector.multi_reduction <add>, %15, %cst_8 [1, 2] : vector<1x8x64xf32> to vector<1xf32>
    %17 = vector.shape_cast %16 : vector<1xf32> to vector<1x1x1xf32>
    %18 = vector.extract %17[0, 0, 0] : f32 from vector<1x1x1xf32>
    %cst_9 = arith.constant 0.001953125 : f32
    %19 = arith.mulf %18, %cst_9 : f32
    %cst_10 = arith.constant 9.99999974E-6 : f32
    %20 = arith.addf %19, %cst_10 : f32
    %21 = math.rsqrt %20 : f32
    %22 = vector.broadcast %21 : f32 to vector<8x64xf32>
    %23 = arith.mulf %13, %22 : vector<8x64xf32>
    %c0_11 = arith.constant 0 : index
    %c0_12 = arith.constant 0 : index
    %c0_13 = arith.constant 0 : index
    %24 = vector.load %arg4[%c0_11, %c0_12, %c0_13] : memref<1x8x64xf32, #tpu.memory_space<vmem>>, vector<1x8x64xf32>
    %25 = vector.shape_cast %24 : vector<1x8x64xf32> to vector<8x64xf32>
    %26 = vector.shape_cast %23 : vector<8x64xf32> to vector<1x8x64xf32>
    tpu.vector_store %arg4[%c0_11, %c0_12, %c0_13], %26 {strides = array<i32>} : memref<1x8x64xf32, #tpu.memory_space<vmem>>, vector<1x8x64xf32>,
    return
  }
  func.func @transform_0(%arg0: i32) -> (i32, i32, i32) {
    %c0_i32 = arith.constant 0 : i32
    %c0_i32_0 = arith.constant 0 : i32
    %c0_i32_1 = arith.constant 0 : i32
    return %arg0, %c0_i32, %c0_i32_0 : i32, i32, i32
  }
  func.func @transform_1(%arg0: i32) -> (i32, i32) {
    %c0_i32 = arith.constant 0 : i32
    %c0_i32_0 = arith.constant 0 : i32
    %c0_i32_1 = arith.constant 0 : i32
    return %c0_i32, %c0_i32_0 : i32, i32
  }
  func.func @transform_2(%arg0: i32) -> (i32, i32) {
    %c0_i32 = arith.constant 0 : i32
    %c0_i32_0 = arith.constant 0 : i32
    %c0_i32_1 = arith.constant 0 : i32
    return %c0_i32, %c0_i32_0 : i32, i32
  }
  func.func @transform_3(%arg0: i32) -> (i32, i32, i32) {
    %c0_i32 = arith.constant 0 : i32
    %c0_i32_0 = arith.constant 0 : i32
    %c0_i32_1 = arith.constant 0 : i32
    return %arg0, %c0_i32, %c0_i32_0 : i32, i32, i32
  }
}

</mosaic_0001>

<bundles_post_ra>
// kernel: tpu_custom_call.1
= control target key start
LH: loop header
LB: loop body
LE: loop exit
PB: predicated region body
PF: predicated region fallthrough
CT: control target
= control target key end

     0   :  { %8 = vsyncpa [#allocation3], 0  ;;  %s683_s0 = inlined_call_operand.hbm [shape: f32[2,16,64], index: 0, kind: input, shape index: {}]   ;;  %s684_s1 = inlined_call_operand.vmem [shape: f32[8,16], index: 1, kind: input, shape index: {}]   ;;  %s685_s2 = inlined_call_operand.vmem [shape: f32[8,1], index: 2, kind: input, shape index: {}]   ;;  %s686_s3 = inlined_call_operand.hbm [shape: f32[2,8,64], index: 3, kind: output, shape index: {}]  }
   0x1   :  { %10 = vsyncpa [#allocation3 + $0x1], 0 }
   0x2   :  { %11 = vsyncpa [#allocation4], 0 }
   0x3   :  { %13 = vsyncpa [#allocation4 + $0x1], 0  ;;  %s546_s12 = smov 0   ;;  %s548_s13 = smov 0  }
   0x4   :  { %s550_s14 = smov 0   ;;  %s552_s15 = smov 0  }
   0x5 LB: > { %s567_s16 = sadd.s32 4294967295, %s521_s15   ;;  %s352_s17 = sadd.s32 4294967294, %s521_s15   ;;  %s521_s15 = sphi %s552_s15, %s696_s15   ;;  %s517_s14 = sphi %s550_s14, %s695_s14   ;;  %s513_s13 = sphi %s548_s13, %s694_s13   ;;  %s509_s12 = sphi %s546_s12, %s693_s12  }
   0x6   : > { %s571_s18 = sadd.s32 1, %s521_s15   ;;  %s26_s19 = sadd.s32 1, %s517_s14 }
   0x7   : > { %s23_s20 = ssub.s32 %s521_s15, %s571_s18  ;;  %p33_p0 = scmp.ne.s32.totalorder %s517_s14, %s513_s13 }
   0x8   : > { %p24_p1 = scmp.eq.s32.totalorder %s23_s20, 0  ;;  %p34_p2 = scmp.eq.s32.totalorder %s521_s15, 0 }
   0x9   : > { %p39_p3 = scmp.ne.s32.totalorder %s513_s13, %s509_s12  ;;  %p40_p4 = scmp.eq.s32.totalorder %s567_s16, 0 }
   0xa   : > { %s583_s21 = scalar_select %p24_p1, %s517_s14, %s26_s19  }
   0xb   : > { %p585_p5 = por %p34_p2, %p33_p0  ;;  %p589_p6 = por %p40_p4, %p39_p3 }
   0xc   : > { %p105_p7 = scmp.eq.s32.totalorder %s567_s16, 1  ;;  %p111_p8 = scmp.eq.s32.totalorder %s352_s17, 1 }
   0xd   : > { %p385_p10 = scmp.lt.s32.totalorder %s521_s15, 2  ;;  %s137_s26 = sand.u32 1, %s517_s14  }
   0xe   : > { %p596_p11 = por %p105_p7, %p33_p0  ;;  %p600_p12 = por %p111_p8, %p39_p3 }
   0xf   : > { %s366_s27 = sshll.u32 %s521_s15, 4  ;;  %s355_s28 = sshll.u32 %s137_s26, 4 }
  0x10   : > { %s146_s4 = scalar_lea.hbm %s683_s0, %s366_s27  ;;  %s141_s6 = scalar_lea.vmem [#allocation2], %s355_s28 }
  0x11   : > { %s147_s5 = sshll.u32 %s146_s4, 4  ;;  %s149_s7 = sshll.u32 %s141_s6, 4  ;;  %s148_s5 = int_to_ptr.hbm [resolvable:$true] %s147_s5  ;;  %s150_s7 = int_to_ptr.vmem [resolvable:$true] %s149_s7 }
  0x12   : > { %p611_p13 = pnand %p385_p10, %p585_p5  ;;  %p358_p0 = scmp.ge.s32.totalorder %s521_s15, 1 }
  0x13   : > { %p157_p1 = scmp.lt.s32.totalorder %s521_s15, 3  ;;  %s138_s9 = scalar_lea.sflag [#allocation3], %s137_s26 }
  0x14   : > { %s425_s10 = sshra.s32 %s148_s5, 4  ;;  %p429_p3 = pneg %p611_p13  ;;  %s426_s10 = int_to_ptr.hbm [resolvable:$true] %s425_s10 }
  0x15   : > { %s427_s11 = scalar_lea.hbm %s426_s10, 16  ;;  %s432_s20 = scalar_lea.hbm %s683_s0, 32 }
  0x16   : > { %p428_p2 = scmp.ne.s32.totalorder %s426_s10, %s427_s11  ;;  %p433_p5 = scmp.lt.s32.totalorder %s426_s10, %s683_s0 }
  0x17   : > { %p434_p8 = scmp.lt.s32.totalorder %s432_s20, %s427_s11 }
  0x18   : > { %p430_p4 = pnand %p429_p3, %p428_p2 }
  0x19   : > { %p435_p10 = por %p434_p8, %p433_p5 }
  0x1a   : > { %p431_p7 = pneg %p430_p4 }
  0x1c   : > { %p436_p9 = pnand %p435_p10, %p431_p7 }
  0x1e   : > { %439 = shalt.err (!%p436_p9)
}
  0x1f   : > { %s523_s26 = smov 128   ;;  %s524_s28 = smov 8  }
  0x20   : > { %380 = dma.hbm_to_vmem [thread:$0]  (!%p611_p13), %s148_s5, 256, %s150_s7, %s138_s9, %s523_s26, %s523_s26, %s524_s28  }
  0x21   : > { %p158_p2 = pnand %p358_p0, %p157_p1 }
  0x22   : > { %s632_s29 = sand.u32 (!%p158_p2), 1, %s513_s13  }
  0x23   : > { %161 = sbr.rel (%p158_p2) target bundleno = 617 (0x269), region = 32  ;;  %s359_s30 = sshll.u32 (!%p158_p2), %s632_s29, 4 }
  0x24   : > { %s164_s4 = scalar_lea.sflag (!%p158_p2), [#allocation3], %s632_s29  ;;  %s167_s6 = scalar_lea.vmem (!%p158_p2), [#allocation2], %s359_s30 }
  0x28   : > { %500 = dma.done.wait (%p589_p6), %s164_s4, 256  }
  0x29   : > { %502 = vsyncadd (%p589_p6), %s164_s4, 4294967040  ;;  %v525_v0 = vmov 0   ;;  %v194_v1 = vld [vmem:[%s167_s6 + $0x8] sm:$0xff]  ;;  %v193_v2 = vld [vmem:[%s167_s6] sm:$0xff]  ;;  %vm200_vm0 = vcmask 130048   ;;  %vm224_vm1 = vcmask 523264  }
  0x2a   : > { %422 = vset.pattern.permute.xlu0 %v525_v0  ;;  %218 = vmatpush.msra.mxu0 %v194_v1  ;;  %v191_v3 = vld [vmem:[%s684_s1] sm:$0xff]  ;;  %s360_s20 = sshll.u32 %s632_s29, 3  ;;  %s363_s22 = sshll.u32 %s567_s16, 3 }
  0x2b   : > { %v192_v4 = vld [vmem:[%s685_s2] sm:$0xff]  ;;  %s277_s28 = scalar_lea.hbm %s686_s3, %s363_s22  ;;  %s190_s30 = scalar_lea.vmem [#allocation5], %s360_s20 }
  0x2c   : > { %197 = vperm.xlu0 %422, %v192_v4   ;;  %219 = vmatpush.msra.mxu0 %v193_v2  ;;  %s279_s4 = sshll.u32 %s190_s30, 4  ;;  %s281_s6 = sshll.u32 %s277_s28, 4  ;;  %s280_s4 = int_to_ptr.vmem [resolvable:$true] %s279_s4  ;;  %s282_s6 = int_to_ptr.hbm [resolvable:$true] %s281_s6 }
  0x2d   : > { %361 = vmatmul.msk.f32.vlgmr.msra.gmra.mxu0 %vm200_vm0, %v191_v3  ;;  %s267_s7 = scalar_lea.sflag [#allocation4], %s632_s29  ;;  %s469_s8 = sshra.s32 %s282_s6, 4  ;;  %s470_s8 = int_to_ptr.hbm [resolvable:$true] %s469_s8 }
  0x2e   : > { %s471_s9 = scalar_lea.hbm %s470_s8, 8  ;;  %p476_p0 = scmp.lt.s32.totalorder %s470_s8, %s686_s3 }
  0x2f   : > { %p472_p6 = scmp.ne.s32.totalorder %s470_s8, %s471_s9 }
  0x31   : > { %p473_p9 = pnand %p472_p6, %p596_p11 }
  0x33   : > { %p474_p13 = pneg %p473_p9 }
  0x9e   : > { %v198_v5 = vpop.permute.xlu0 %197 }
  0xaa   : > { %v221_v6 = vpop.f32.mrf.mxu0 }
  0xab   : > { %v222_v7 = vadd.f32 %v221_v6, %v198_v5 }
  0xad   : > { %v225_v8 = vsel %vm224_vm1, %v222_v7, 0.0 }
  0xae   : > { %226 = vadd.xlane.f32.xlu0 %v225_v8 }
 0x121   : > { %v227_v9 = vpop.xlane.xlu0 %226 }
 0x122   : > { %v228_v10 = vrot.slane %v227_v9, 4 }
 0x124   : > { %v229_v11 = vadd.f32 %v228_v10, %v227_v9 }
 0x126   : > { %v230_v12 = vrot.slane %v229_v11, 2 }
 0x128   : > { %v231_v13 = vadd.f32 %v230_v12, %v229_v11 }
 0x12a   : > { %v232_v14 = vrot.slane %v231_v13, 1 }
 0x12c   : > { %v233_v15 = vadd.f32 %v232_v14, %v231_v13 }
 0x12e   : > { %367 = vpush %v233_v15 }
 0x15f   : > { %s368_s23 = spop %367 }
 0x160   : > { %s235_s10 = smul.f32 0.001953125, %s368_s23 }
 0x162   : > { %v236_v16 = vstv %s235_s10  ;;  %s475_s10 = scalar_lea.hbm %s686_s3, 16 }
 0x163   : > { %v237_v17 = vsub.f32 %v222_v7, %v236_v16  ;;  %p477_p1 = scmp.lt.s32.totalorder %s475_s10, %s471_s9 }
 0x165   : > { %v238_v18 = vmul.f32 %v237_v17, %v237_v17  ;;  %p478_p3 = por %p477_p1, %p476_p0 }
 0x167   : > { %v239_v19 = vsel %vm224_vm1, %v238_v18, 0.0  ;;  %p479_p4 = pnand %p478_p3, %p474_p13 }
 0x168   : > { %240 = vadd.xlane.f32.xlu1 %v239_v19 }
 0x1db   : > { %v241_v20 = vpop.xlane.xlu1 %240 }
 0x1dc   : > { %v242_v21 = vrot.slane %v241_v20, 4 }
 0x1de   : > { %v243_v22 = vadd.f32 %v242_v21, %v241_v20 }
 0x1e0   : > { %v244_v23 = vrot.slane %v243_v22, 2 }
 0x1e2   : > { %v245_v24 = vadd.f32 %v244_v23, %v243_v22 }
 0x1e4   : > { %v246_v25 = vrot.slane %v245_v24, 1 }
 0x1e6   : > { %v247_v26 = vadd.f32 %v246_v25, %v245_v24 }
 0x1e8   : > { %369 = vpush %v247_v26 }
 0x219   : > { %s370_s11 = spop %369 }
 0x21a   : > { %s249_s17 = smul.f32 0.001953125, %s370_s11 }
 0x21c   : > { %s250_s19 = sadd.f32 1e-05, %s249_s17 }
 0x21e   : > { %v251_v27 = vstv %s250_s19 }
 0x21f   : > { %423 = vrsqrt.f32 %v251_v27  ;;  %vm258_vm3 = vweird.f32 %v251_v27 }
 0x225   : > { %v424_v28 = vpop.eup %423 }
 0x226   : > { %v253_v29 = vmul.f32 %v424_v28, %v251_v27  ;;  %vm259_vm2 = vweird.f32 %v424_v28 }
 0x227   : > { %vm260_vm4 = vmor %vm258_vm3, %vm259_vm2 }
 0x228   : > { %v254_v30 = vmul.f32 %v424_v28, %v253_v29 }
 0x22a   : > { %v255_v31 = vmul.f32 0.5, %v254_v30 }
 0x22c   : > { %v256_v32 = vsub.f32 1.5, %v255_v31 }
 0x22e   : > { %v257_v33 = vmul.f32 %v424_v28, %v256_v32 }
 0x230   : > { %v261_v34 = vsel %vm260_vm4, %v424_v28, %v257_v33 }
 0x231   : > { %371 = vpush %v261_v34 }
 0x262   : > { %s372_s5 = spop %371 }
 0x263   : > { %v263_v35 = vstv %s372_s5 }
 0x264   : > { %v264_v36 = vmul.f32 %v263_v35, %v237_v17 }
 0x266   : > { %265 = vst.msk [vmem:[%s190_s30] sm:$0xff] %vm224_vm1, %v264_v36 }
 0x267   : > { %482 = shalt.err (!%p479_p4)
}
 0x268   : > { %375 = dma.vmem_to_hbm [thread:$0]  (%p596_p11), %s280_s4, 128, %s282_s6, %s267_s7  }
 0x269 PF: > { %s293_s29 = sand.u32 1, %s509_s12   ;;  %p692_p7 = scmp.ge.s32.totalorder %s521_s15, 2 }
 0x26a   : > { %s294_s19 = scalar_lea.sflag [#allocation4], %s293_s29 }
 0x26b   : > { %p382_p5 = pnand %p692_p7, %p600_p12 }
 0x26d   : > { %p383_p8 = pneg %p382_p5 }
 0x26f   : > { %504 = dma.done.wait (%p383_p8), %s294_s19, 128  }
 0x270   : > { %506 = vsyncadd (%p383_p8), %s294_s19, 4294967168  ;;  %p16_p10 = scmp.ge.s32.totalorder %s571_s18, 4   ;;  %s693_s12 = smov %s513_s13 }
 0x271   : > { %s694_s13 = smov %s517_s14  ;;  %s695_s14 = smov %s583_s21 }
 0x272   : > { %s696_s15 = smov %s571_s18  ;;  %18 = sbr.rel (!%p16_p10) target bundleno = 5 (0x5), region = 77 }
 0x277   :  { %300 = vsyncpa [#allocation3], 1 }
 0x278   :  { %302 = vsyncpa [#allocation3 + $0x1], 1 }
 0x279   :  { %303 = vsyncpa [#allocation4], 1 }
 0x27a   :  { %305 = vsyncpa [#allocation4 + $0x1], 1 }

</bundles_post_ra>
